<compile_context>
chip_gen: v7x
topology: tpu7x:2x2x1
jax: 0.10.0
libtpu: 0.0.40
codegen_flags: <defaults>
</compile_context>

<pallas_src>
import numpy as np
import jax
import jax.numpy as jnp
from jax.experimental import pallas as pl
from jax.experimental.pallas import tpu as pltpu


# ----------------------------------------------------------------------------
# Small helpers
# ----------------------------------------------------------------------------
def _round_up(x, m):
    return ((x + m - 1) // m) * m


def _cdiv(a, b):
    return (a + b - 1) // b


def _next_pow2(x):
    return 1 << (max(int(x), 1) - 1).bit_length()


# ----------------------------------------------------------------------------
# Parameter construction (matches torchaudio slaney fbanks and
# torch.hann_window(periodic=True)).
# ----------------------------------------------------------------------------
def _hz_to_mel_slaney(f):
    f = np.asarray(f, dtype=np.float64)
    f_sp = 200.0 / 3.0
    min_log_hz = 1000.0
    min_log_mel = min_log_hz / f_sp
    logstep = np.log(6.4) / 27.0
    mel = f / f_sp
    mel = np.where(
        f >= min_log_hz,
        min_log_mel + np.log(np.maximum(f, min_log_hz) / min_log_hz) / logstep,
        mel,
    )
    return mel


def _mel_to_hz_slaney(m):
    m = np.asarray(m, dtype=np.float64)
    f_sp = 200.0 / 3.0
    min_log_hz = 1000.0
    min_log_mel = min_log_hz / f_sp
    logstep = np.log(6.4) / 27.0
    f = f_sp * m
    f = np.where(m >= min_log_mel, min_log_hz * np.exp(logstep * (m - min_log_mel)), f)
    return f


def melscale_fbanks(n_freqs, f_min, f_max, n_mels, sample_rate):
    """Slaney-scale, slaney-normalized mel filterbank, shape (n_freqs, n_mels)."""
    all_freqs = np.linspace(0.0, sample_rate // 2, n_freqs)
    m_min = _hz_to_mel_slaney(f_min)
    m_max = _hz_to_mel_slaney(f_max)
    m_pts = np.linspace(m_min, m_max, n_mels + 2)
    f_pts = _mel_to_hz_slaney(m_pts)
    f_diff = f_pts[1:] - f_pts[:-1]
    slopes = f_pts[None, :] - all_freqs[:, None]
    down_slopes = -slopes[:, :-2] / f_diff[:-1]
    up_slopes = slopes[:, 2:] / f_diff[1:]
    fb = np.maximum(0.0, np.minimum(down_slopes, up_slopes))
    enorm = 2.0 / (f_pts[2 : n_mels + 2] - f_pts[:n_mels])
    fb = fb * enorm[None, :]
    return fb.astype(np.float32)


def hann_window_periodic(window_size):
    n = np.arange(window_size, dtype=np.float64)
    return (0.5 * (1.0 - np.cos(2.0 * np.pi * n / window_size))).astype(np.float32)


def windowed_dft_matrices(fft_size, window_size):
    """Hann window folded into real/imag DFT bases: two (n_fft, n_fft//2 + 1) f32."""
    win = hann_window_periodic(window_size)
    # torch.stft zero-pads the window to n_fft, centered.
    pad_l = (fft_size - window_size) // 2
    win_padded = np.zeros(fft_size, dtype=np.float64)
    win_padded[pad_l : pad_l + window_size] = win
    n_freqs = fft_size // 2 + 1
    n = np.arange(fft_size, dtype=np.float64)[:, None]            # (n_fft, 1)
    k = np.arange(n_freqs, dtype=np.float64)[None, :]             # (1, F)
    ang = 2.0 * np.pi * n * k / fft_size
    wcos = (win_padded[:, None] * np.cos(ang)).astype(np.float32)
    wsin = (win_padded[:, None] * np.sin(ang)).astype(np.float32)
    return wcos, wsin


def build_weights(fft_size, window_size, mel_size, sample_rate, min_freq, max_freq):
    """Returns lane-padded bf16 weights:
         W     : (n_fft, 2*F_pad)   = [Wcos | Wsin], zero-padded columns
         fbank : (F_pad, mel_pad)   zero-padded rows/cols
       The Nyquist frequency bin is dropped whenever its mel weight is exactly
       zero (max_freq <= sample_rate/2), which removes the F-lane padding waste
       of the dominant MXU matmul for typical power-of-two n_fft.
    """
    n_freqs = fft_size // 2 + 1
    fb_full = melscale_fbanks(n_freqs, min_freq, max_freq, mel_size, sample_rate)
    wcos, wsin = windowed_dft_matrices(fft_size, window_size)

    n_use = n_freqs
    if np.allclose(fb_full[-1], 0.0):   # exact only when the Nyquist mel weight is 0
        n_use = n_freqs - 1

    f_pad = _round_up(n_use, 128)
    mel_pad = _round_up(mel_size, 128)
    w = np.zeros((fft_size, 2 * f_pad), np.float32)
    w[:, :n_use] = wcos[:, :n_use]
    w[:, f_pad : f_pad + n_use] = wsin[:, :n_use]
    fb = np.zeros((f_pad, mel_pad), np.float32)
    fb[:n_use, :mel_size] = fb_full[:n_use]
    return jnp.asarray(w, jnp.bfloat16), jnp.asarray(fb, jnp.bfloat16), f_pad, mel_pad


def frame_signal(speech, fft_size, hop_size, n_frames):
    """Reference-only framing (center=True reflect padding + gather)."""
    pad = fft_size // 2
    padded = jnp.pad(speech, ((0, 0), (pad, pad)), mode="reflect")
    idx = jnp.arange(n_frames)[:, None] * hop_size + jnp.arange(fft_size)[None, :]
    return padded[:, idx]                                        # (B, n_frames, n_fft)


# ----------------------------------------------------------------------------
# Pallas kernel
# ----------------------------------------------------------------------------
def _make_logmel_kernel(eps, from_linear, f_pad, tile_m, hop, n_fft, n_chunks):
    def kernel(valid_ref, x2_ref, tail_ref, w_ref, fbank_ref, out_ref):
        b = pl.program_id(0)
        j = pl.program_id(1)

        # ---- in-kernel framing ------------------------------------------
        # x2_ref   : (tile_m, hop)  hop-chunk rows m -> speech[m*hop : (m+1)*hop]
        # tail_ref : (c_pad, hop)   the next c_pad rows (frame overlap)
        xwin = jnp.concatenate([x2_ref[...], tail_ref[...]], axis=0)
        pieces = []
        for c in range(n_chunks):                 # static, small (ceil(n_fft/hop))
            w_c = min(hop, n_fft - c * hop)
            pieces.append(xwin[c : c + tile_m, :w_c])
        frames = pieces[0] if n_chunks == 1 else jnp.concatenate(pieces, axis=1)
        frames = frames.astype(jnp.bfloat16)                     # (tile_m, n_fft)

        # ---- windowed DFT: one fused MXU pass, f32 accumulation -----------
        reim = jnp.dot(frames, w_ref[...], preferred_element_type=jnp.float32)
        re = reim[:, :f_pad]                                     # lane-aligned slices
        im = reim[:, f_pad:]
        power = re * re + im * im                                # (tile_m, F_pad) f32
        if from_linear:
            power = jnp.sqrt(power)

        # ---- mel projection + log -----------------------------------------
        # TODO(synk): bf16 cast of `power` costs ~0.4% rel. error near silence;
        # use a hi/lo bf16 split here if bit-closeness to f32 torchaudio matters.
        mel = jnp.dot(power.astype(jnp.bfloat16), fbank_ref[...],
                      preferred_element_type=jnp.float32)        # (tile_m, mel_pad)
        logmel = jnp.log(mel + eps)

        # ---- mask from prefetched lengths (narrow (tile_m, 1) iota) --------
        row = jax.lax.broadcasted_iota(jnp.int32, (tile_m, 1), 0) + j * tile_m
        out_ref[...] = jnp.where(row < valid_ref[b], logmel, 0.0)

    return kernel


def log_mel_spectrogram(
    speech,
    length,
    *,
    fft_size,
    hop_size,
    window_size,
    mel_size,
    sample_rate,
    min_freq,
    max_freq,
    eps=1e-12,
    from_linear=False,
    frame_tile=512,
):
    """Returns (log_mel: (B, T//hop + 1, mel_size) f32, mask: (B, T//hop + 1) bool)."""
    speech = jnp.asarray(speech, jnp.float32)
    B, T = speech.shape
    n_fft = fft_size
    hop = hop_size
    pad = n_fft // 2
    if T <= pad:
        raise ValueError("sequence_length must exceed fft_size // 2 for reflect padding")

    n_frames = 1 + T // hop
    n_chunks = _cdiv(n_fft, hop)                   # hop-chunks per frame
    c_pad = max(8, _next_pow2(n_chunks - 1))       # overlap rows fetched per tile

    # --- frame-tile size: multiple of 16, <= frame_tile; keep >= ~4 grid steps
    # so v7x's two TensorCores both get work via the "parallel" axes. ---------
    frame_tile = max(16, _round_up(frame_tile, 16))
    tile_m = min(frame_tile, _round_up(n_frames, 16))
    while B * _cdiv(n_frames, tile_m) < 4 and tile_m > 128:
        tile_m = max(128, _round_up(tile_m // 2, 16))
    tile_m = _round_up(tile_m, c_pad)              # tail block indexing divisibility
    n_frames_pad = _round_up(n_frames, tile_m)
    n_tiles = n_frames_pad // tile_m

    # --- hop-chunk view of the (reflect + zero) padded speech ----------------
    # Raw speech-sized; the old ~n_fft/hop-inflated frames tensor is gone.
    total_rows = max(n_frames_pad + c_pad, _cdiv(T + 2 * pad, hop))
    padded = jnp.pad(speech, ((0, 0), (pad, pad)), mode="reflect")
    padded = jnp.pad(padded, ((0, 0), (0, total_rows * hop - (T + 2 * pad))))
    x2 = padded.reshape(B, total_rows, hop)
    # TODO(synk): cast x2 to bf16 to halve the speech HBM read once packed-bf16
    # sublane-offset slicing is validated across all target generations.

    # --- sequence mask / prefetched lengths ----------------------------------
    valid = (1 + jnp.asarray(length, jnp.int32) // hop).astype(jnp.int32)   # (B,)
    mask_bool = jnp.arange(n_frames, dtype=jnp.int32)[None, :] < valid[:, None]

    # --- lane-padded bf16 weights (Nyquist bin dropped when exact) -----------
    w, fbank, f_pad, mel_pad = build_weights(
        fft_size, window_size, mel_size, sample_rate, min_freq, max_freq
    )

    kernel = _make_logmel_kernel(eps, from_linear, f_pad, tile_m, hop, n_fft, n_chunks)

    ratio = tile_m // c_pad
    out_padded = pl.pallas_call(
        kernel,
        out_shape=jax.ShapeDtypeStruct((B, n_frames_pad, mel_pad), jnp.float32),
        grid_spec=pltpu.PrefetchScalarGridSpec(
            num_scalar_prefetch=1,                 # `valid` lengths -> SMEM
            grid=(B, n_tiles),
            in_specs=[
                # main hop-chunk rows for this frame tile: (tile_m, hop)
                pl.BlockSpec((None, tile_m, hop), lambda b, j, valid: (b, j, 0)),
                # overlap rows just past the tile: (c_pad, hop) from the same array
                pl.BlockSpec((None, c_pad, hop),
                             lambda b, j, valid: (b, (j + 1) * ratio, 0)),
                # fused [Wcos | Wsin], whole array, resident across the grid.
                # TODO(synk): pipeline_mode=pl.Buffered(1) to single-buffer the
                # resident weights for very large n_fft on v7x (64 MiB VMEM).
                pl.BlockSpec((n_fft, 2 * f_pad), lambda b, j, valid: (0, 0)),
                # mel filterbank, whole array, resident across the grid.
                pl.BlockSpec((f_pad, mel_pad), lambda b, j, valid: (0, 0)),
            ],
            out_specs=pl.BlockSpec(
                (None, tile_m, mel_pad), lambda b, j, valid: (b, j, 0)
            ),
        ),
        compiler_params=pltpu.CompilerParams(
            dimension_semantics=("parallel", "parallel"),
            vmem_limit_bytes=48 * 1024 * 1024,
        ),
    )(valid, x2, x2, w, fbank)

    # Slice the lane/row padding back off (module returns (B, n_frames, mel_size)).
    return out_padded[:, :n_frames, :mel_size], mask_bool


# ----------------------------------------------------------------------------
# Pure-JAX reference with matching bf16 matmul precision (sanity check)
# ----------------------------------------------------------------------------
def _reference(speech, length, *, fft_size, hop_size, window_size, mel_size,
               sample_rate, min_freq, max_freq, eps, from_linear):
    B, T = speech.shape
    n_frames = 1 + T // hop_size
    w_bf, fb_bf, f_pad, _ = build_weights(
        fft_size, window_size, mel_size, sample_rate, min_freq, max_freq
    )
    frames = frame_signal(speech, fft_size, hop_size, n_frames).astype(jnp.bfloat16)
    hi = jax.lax.Precision.HIGHEST
    reim = jnp.einsum("bfn,nk->bfk", frames.astype(jnp.float32),
                      w_bf.astype(jnp.float32), precision=hi)
    re, im = reim[..., :f_pad], reim[..., f_pad:]
    power = re * re + im * im
    if from_linear:
        power = jnp.sqrt(power)
    mel = jnp.einsum("bfk,km->bfm",
                     power.astype(jnp.bfloat16).astype(jnp.float32),
                     fb_bf.astype(jnp.float32), precision=hi)
    logmel = jnp.log(mel + eps)
    valid = 1 + jnp.asarray(length, jnp.int32) // hop_size
    maskb = jnp.arange(n_frames, dtype=jnp.int32)[None, :] < valid[:, None]
    out = jnp.where(maskb[:, :, None], logmel, 0.0)
    return out[:, :, :mel_size], maskb


if __name__ == "__main__":
    # Small, forward-consistent shapes.
    B = 2
    T = 128
    fft_size = 64
    hop_size = 16
    window_size = 64
    mel_size = 16
    sample_rate = 16000
    min_freq = 0.0
    max_freq = 8000.0
    eps = 1e-12

    key = jax.random.PRNGKey(0)
    speech = jax.random.normal(key, (B, T), dtype=jnp.float32)
    length = jnp.array([128, 96], dtype=jnp.int32)

    logmel, mask = log_mel_spectrogram(
        speech,
        length,
        fft_size=fft_size,
        hop_size=hop_size,
        window_size=window_size,
        mel_size=mel_size,
        sample_rate=sample_rate,
        min_freq=min_freq,
        max_freq=max_freq,
        eps=eps,
    )
    logmel = jax.block_until_ready(logmel)
    mask = jax.block_until_ready(mask)

    n_frames = T // hop_size + 1
    assert logmel.shape == (B, n_frames, mel_size)
    assert mask.shape == (B, n_frames)

    # Sanity check against a pure-JAX reference of the same (bf16-input) math.
    ref, ref_mask = _reference(
        speech, length,
        fft_size=fft_size, hop_size=hop_size, window_size=window_size,
        mel_size=mel_size, sample_rate=sample_rate,
        min_freq=min_freq, max_freq=max_freq, eps=eps, from_linear=False,
    )
    np.testing.assert_array_equal(np.asarray(mask), np.asarray(ref_mask))
    np.testing.assert_allclose(np.asarray(logmel), np.asarray(ref), rtol=2e-3, atol=2e-3)

    # Masked frames must be exactly zero.
    assert np.all(np.asarray(logmel)[~np.asarray(mask)] == 0.0)

    print("KERNEL_OK")
</pallas_src>

<mosaic_0001>
module attributes {stable_mosaic.version = 11 : i64} {
  func.func @kernel(%arg0: i32, %arg1: i32, %arg2: memref<2xi32, #tpu.memory_space<smem>>, %arg3: memref<1x16x16xf32, #tpu.memory_space<vmem>>, %arg4: memref<1x8x16xf32, #tpu.memory_space<vmem>>, %arg5: memref<64x256xbf16, #tpu.memory_space<vmem>>, %arg6: memref<128x128xbf16, #tpu.memory_space<vmem>>, %arg7: memref<1x16x128xf32, #tpu.memory_space<vmem>>) attributes {dimension_semantics = [#tpu.dimension_semantics<parallel>, #tpu.dimension_semantics<parallel>], iteration_bounds = array<i64: 2, 1>, scalar_prefetch = 1 : i64, scratch_operands = 0 : i64, tpu.core_type = #tpu.core_type<tc>, window_params = [{transform_indices = @transform_0, window_bounds = array<i64: 1, 16, 16>}, {transform_indices = @transform_1, window_bounds = array<i64: 1, 8, 16>}, {pipeline_mode = #tpu.pipeline_mode<synchronous>, transform_indices = @transform_2, window_bounds = array<i64: 64, 256>}, {pipeline_mode = #tpu.pipeline_mode<synchronous>, transform_indices = @transform_3, window_bounds = array<i64: 128, 128>}, {transform_indices = @transform_4, window_bounds = array<i64: 1, 16, 128>}]} {
    %c0 = arith.constant 0 : index
    %c0_0 = arith.constant 0 : index
    %c0_1 = arith.constant 0 : index
    %0 = vector.load %arg3[%c0, %c0_0, %c0_1] : memref<1x16x16xf32, #tpu.memory_space<vmem>>, vector<1x16x16xf32>
    %1 = vector.shape_cast %0 : vector<1x16x16xf32> to vector<16x16xf32>
    %c0_2 = arith.constant 0 : index
    %c0_3 = arith.constant 0 : index
    %c0_4 = arith.constant 0 : index
    %2 = vector.load %arg4[%c0_2, %c0_3, %c0_4] : memref<1x8x16xf32, #tpu.memory_space<vmem>>, vector<1x8x16xf32>
    %3 = vector.shape_cast %2 : vector<1x8x16xf32> to vector<8x16xf32>
    %4 = tpu.concatenate %1, %3 in 0 : vector<16x16xf32>, vector<8x16xf32> -> vector<24x16xf32>
    %5 = vector.extract_strided_slice %4 {offsets = [0, 0], sizes = [16, 16], strides = [1, 1]} : vector<24x16xf32> to vector<16x16xf32>
    %6 = vector.extract_strided_slice %4 {offsets = [1, 0], sizes = [16, 16], strides = [1, 1]} : vector<24x16xf32> to vector<16x16xf32>
    %7 = vector.extract_strided_slice %4 {offsets = [2, 0], sizes = [16, 16], strides = [1, 1]} : vector<24x16xf32> to vector<16x16xf32>
    %8 = vector.extract_strided_slice %4 {offsets = [3, 0], sizes = [16, 16], strides = [1, 1]} : vector<24x16xf32> to vector<16x16xf32>
    %9 = tpu.concatenate %5, %6, %7, %8 in 1 : vector<16x16xf32>, vector<16x16xf32>, vector<16x16xf32>, vector<16x16xf32> -> vector<16x64xf32>
    %10 = arith.truncf %9 : vector<16x64xf32> to vector<16x64xbf16>
    %c0_5 = arith.constant 0 : index
    %c0_6 = arith.constant 0 : index
    %11 = vector.load %arg5[%c0_5, %c0_6] : memref<64x256xbf16, #tpu.memory_space<vmem>>, vector<64x256xbf16>
    %cst = arith.constant dense<0.000000e+00> : vector<16x256xf32>
    %12 = tpu.matmul %10, %11, %cst {dimension_numbers = #tpu.dot_dimension_numbers<[1], [0], [0], [1], [0, 0, 1, 1], [], []>} : vector<16x64xbf16>, vector<64x256xbf16>, vector<16x256xf32> -> vector<16x256xf32>
    %13 = vector.extract_strided_slice %12 {offsets = [0, 0], sizes = [16, 128], strides = [1, 1]} : vector<16x256xf32> to vector<16x128xf32>
    %14 = vector.extract_strided_slice %12 {offsets = [0, 128], sizes = [16, 128], strides = [1, 1]} : vector<16x256xf32> to vector<16x128xf32>
    %15 = arith.mulf %13, %13 : vector<16x128xf32>
    %16 = arith.mulf %14, %14 : vector<16x128xf32>
    %17 = arith.addf %15, %16 : vector<16x128xf32>
    %18 = arith.truncf %17 : vector<16x128xf32> to vector<16x128xbf16>
    %c0_7 = arith.constant 0 : index
    %c0_8 = arith.constant 0 : index
    %19 = vector.load %arg6[%c0_7, %c0_8] : memref<128x128xbf16, #tpu.memory_space<vmem>>, vector<128x128xbf16>
    %cst_9 = arith.constant dense<0.000000e+00> : vector<16x128xf32>
    %20 = tpu.matmul %18, %19, %cst_9 {dimension_numbers = #tpu.dot_dimension_numbers<[1], [0], [0], [1], [0, 0, 1, 1], [], []>} : vector<16x128xbf16>, vector<128x128xbf16>, vector<16x128xf32> -> vector<16x128xf32>
    %cst_10 = arith.constant 9.99999996E-13 : f32
    %21 = vector.broadcast %cst_10 : f32 to vector<16x128xf32>
    %22 = arith.addf %20, %21 : vector<16x128xf32>
    %23 = math.log %22 : vector<16x128xf32>
    %24 = tpu.iota {dimensions = array<i32: 0>} : vector<16x1xi32>
    %c16_i32 = arith.constant 16 : i32
    %25 = arith.muli %arg1, %c16_i32 : i32
    %26 = vector.broadcast %25 : i32 to vector<16x1xi32>
    %27 = arith.addi %24, %26 : vector<16x1xi32>
    %28 = arith.index_cast %arg0 : i32 to index
    %29 = memref.load %arg2[%28] : memref<2xi32, #tpu.memory_space<smem>>
    %30 = vector.broadcast %29 : i32 to vector<16x1xi32>
    %31 = arith.cmpi slt, %27, %30 : vector<16x1xi32>
    %cst_11 = arith.constant 0.000000e+00 : f32
    %32 = vector.shape_cast %31 : vector<16x1xi1> to vector<16x1xi1>
    %33 = vector.broadcast %32 : vector<16x1xi1> to vector<16x128xi1>
    %34 = vector.broadcast %cst_11 : f32 to vector<16x128xf32>
    %35 = arith.select %33, %23, %34 : vector<16x128xi1>, vector<16x128xf32>
    %c0_12 = arith.constant 0 : index
    %c0_13 = arith.constant 0 : index
    %c0_14 = arith.constant 0 : index
    %36 = vector.load %arg7[%c0_12, %c0_13, %c0_14] : memref<1x16x128xf32, #tpu.memory_space<vmem>>, vector<1x16x128xf32>
    %37 = vector.shape_cast %36 : vector<1x16x128xf32> to vector<16x128xf32>
    %38 = vector.shape_cast %35 : vector<16x128xf32> to vector<1x16x128xf32>
    tpu.vector_store %arg7[%c0_12, %c0_13, %c0_14], %38 {strides = array<i32>} : memref<1x16x128xf32, #tpu.memory_space<vmem>>, vector<1x16x128xf32>,
    return
  }
  func.func @transform_0(%arg0: i32, %arg1: i32, %arg2: memref<2xi32, #tpu.memory_space<smem>>) -> (i32, i32, i32) {
    %c0_i32 = arith.constant 0 : i32
    %c0_i32_0 = arith.constant 0 : i32
    return %arg0, %arg1, %c0_i32 : i32, i32, i32
  }
  func.func @transform_1(%arg0: i32, %arg1: i32, %arg2: memref<2xi32, #tpu.memory_space<smem>>) -> (i32, i32, i32) {
    %c1_i32 = arith.constant 1 : i32
    %0 = arith.addi %arg1, %c1_i32 : i32
    %c2_i32 = arith.constant 2 : i32
    %1 = arith.muli %0, %c2_i32 : i32
    %c0_i32 = arith.constant 0 : i32
    %c0_i32_0 = arith.constant 0 : i32
    return %arg0, %1, %c0_i32 : i32, i32, i32
  }
  func.func @transform_2(%arg0: i32, %arg1: i32, %arg2: memref<2xi32, #tpu.memory_space<smem>>) -> (i32, i32) {
    %c0_i32 = arith.constant 0 : i32
    %c0_i32_0 = arith.constant 0 : i32
    %c0_i32_1 = arith.constant 0 : i32
    return %c0_i32, %c0_i32_0 : i32, i32
  }
  func.func @transform_3(%arg0: i32, %arg1: i32, %arg2: memref<2xi32, #tpu.memory_space<smem>>) -> (i32, i32) {
    %c0_i32 = arith.constant 0 : i32
    %c0_i32_0 = arith.constant 0 : i32
    %c0_i32_1 = arith.constant 0 : i32
    return %c0_i32, %c0_i32_0 : i32, i32
  }
  func.func @transform_4(%arg0: i32, %arg1: i32, %arg2: memref<2xi32, #tpu.memory_space<smem>>) -> (i32, i32, i32) {
    %c0_i32 = arith.constant 0 : i32
    %c0_i32_0 = arith.constant 0 : i32
    return %arg0, %arg1, %c0_i32 : i32, i32, i32
  }
}

</mosaic_0001>

<bundles_post_ra>
// kernel: tpu_custom_call.1
= control target key start
LH: loop header
LB: loop body
LE: loop exit
PB: predicated region body
PF: predicated region fallthrough
CT: control target
= control target key end

     0   :  { %s1185_s0 = inlined_call_operand.vmem [shape: s32[2], index: 0, kind: input, shape index: {}]   ;;  %s1186_s1 = inlined_call_operand.vmem [shape: f32[2,24,16], index: 1, kind: input, shape index: {}]   ;;  %s1187_s2 = inlined_call_operand.vmem [shape: f32[2,24,16], index: 2, kind: input, shape index: {}]   ;;  %s1188_s3 = inlined_call_operand.vmem [shape: bf16[64,256], index: 3, kind: input, shape index: {}]   ;;  %s1189_s4 = inlined_call_operand.vmem [shape: bf16[128,128], index: 4, kind: input, shape index: {}]   ;;  %s1190_s5 = inlined_call_operand.hbm [shape: f32[2,16,128], index: 5, kind: output, shape index: {}]  }
   0x1   :  { %s10_s20 = sshll.u32 %s1185_s0, 4  ;;  %s11_s20 = int_to_ptr.vmem [resolvable:$true] %s10_s20 }
   0x2   :  { %s863_s21 = scalar_lea.vmem %s11_s20, 16  ;;  %p868_p1 = scmp.lt.s32.totalorder %s11_s20, %s11_s20 }
   0x3   :  { %p864_p0 = scmp.ne.s32.totalorder %s11_s20, %s863_s21  ;;  %p869_p2 = scmp.lt.s32.totalorder %s863_s21, %s863_s21 }
   0x5   :  { %p870_p3 = por %p869_p2, %p868_p1 }
   0x7   :  { %p871_p4 = pnand %p870_p3, %p864_p0 }
   0x9   :  { %874 = shalt.err (!%p871_p4)  }
   0xa   :  { %s957_s22 = smov [#allocation3]  }
   0xb   :  { %13 = dma.vmem_to_smem %s11_s20, 16, %s957_s22, [#allocation2] }
   0xc   :  { %927 = dma.done.wait [#allocation2], 16 }
   0xd   :  { %928 = vsyncadd [#allocation2], 4294967280 }
   0xe   :  { %15 = sfence }
   0xf   :  { %16 = vsyncpa [#allocation5], 0 }
  0x10   :  { %18 = vsyncpa [#allocation5 + $0x1], 0  ;;  %s1000_s23 = smov 0   ;;  %s1002_s24 = smov 0  }
  0x11   :  { %s1004_s0 = smov 0   ;;  %s1006_s25 = smov 0  }
  0x12   :  { %s1008_s26 = smov 0   ;;  %s1010_s27 = smov 0  }
  0x13 LB: > { %s695_s28 = sadd.s32 4294967295, %s955_s27   ;;  %s696_s29 = sadd.s32 4294967294, %s955_s27   ;;  %s955_s27 = sphi %s1010_s27, %s24_s27   ;;  %s951_s26 = sphi %s1008_s26, %s1197_s26   ;;  %s947_s25 = sphi %s1006_s25, %s1196_s25   ;;  %s943_s0 = sphi %s1004_s0, %s1195_s0   ;;  %s939_s24 = sphi %s1002_s24, %s1194_s24   ;;  %s935_s23 = sphi %s1000_s23, %s1193_s23  }
  0x14   : > { %s36_s30 = sadd.s32 1, %s951_s26  ;;  %s147_s6 = sadd.s32 1, %s943_s0 }
  0x15   : > { %p38_p5 = scmp.ge.s32.totalorder %s36_s30, 2  ;;  %p157_p6 = scmp.ne.s32.totalorder %s943_s0, %s939_s24 }
  0x16   : > { %p158_p7 = scmp.eq.s32.totalorder %s695_s28, 1  ;;  %p163_p8 = scmp.ne.s32.totalorder %s939_s24, %s935_s23 }
  0x17   : > { %s1199_s30 = smov (%p38_p5, %s36_s30), 0  ;;  %p164_p10 = scmp.eq.s32.totalorder %s696_s29, 1 }
  0x18   : > { %p1040_p9 = por %p158_p7, %p157_p6  ;;  %s142_s8 = ssub.s32 %s951_s26, %s1199_s30 }
  0x19   : > { %p699_p11 = scmp.ge.s32.totalorder %s955_s27, 1  ;;  %p145_p12 = scmp.eq.s32.totalorder %s142_s8, 0 }
  0x1a   : > { %p1047_p13 = por %p164_p10, %p163_p8  ;;  %p224_p0 = scmp.lt.s32.totalorder %s955_s27, 3 }
  0x1b   : > { %s1053_s10 = scalar_select %p145_p12, %s943_s0, %s147_s6  }
  0x1c   : > { %p225_p1 = pnand %p699_p11, %p224_p0 }
  0x1d   : > { %p273_p2 = scmp.lt.s32.totalorder (!%p225_p1), %s947_s25, 1  ;;  %v839_v0 = vld [vmem:[%s1188_s3 + $0x4] ss:$8 sps:$4 sm:$0xff] (!%p225_p1)   ;;  %v841_v1 = vld [vmem:[%s1188_s3] ss:$8 sps:$4 sm:$0xff] (!%p225_p1)   ;;  %vm306_vm0 = vcmask (!%p225_p1), 1046528  }
  0x1e   : > { %228 = sbr.rel (%p225_p1) target bundleno = 640 (0x280), region = 36  ;;  %v842_v2 = vld [vmem:[%s1188_s3 + $0x14] ss:$8 sps:$4 sm:$0xff] (!%p225_p1)   ;;  %404 = vmatprep.subr.bf16.mxu0 (!%p225_p1), %v839_v0  ;;  %v844_v3 = vld [vmem:[%s1188_s3 + $0x10] ss:$8 sps:$4 sm:$0xff] (!%p225_p1)   ;;  %vm318_vm1 = vcmask (!%p225_p1), 1045504  }
  0x1f   : > { %405 = vmatpush1.bf16.msra.mxu0 (!%p225_p1), %v841_v1  ;;  %v845_v4 = vld [vmem:[%s1188_s3 + $0x24] ss:$8 sps:$4 sm:$0xff] (!%p225_p1)   ;;  %v847_v5 = vld [vmem:[%s1188_s3 + $0x20] ss:$8 sps:$4 sm:$0xff] (!%p225_p1)   ;;  %vm330_vm2 = vcmask (!%p225_p1), 1044480   ;;  %v958_v25 = vmov (!%p225_p1), 0  }
  0x20   : > { %406 = vmatprep.subr.bf16.mxu0 (!%p225_p1), %v842_v2  ;;  %v848_v8 = vld [vmem:[%s1188_s3 + $0x34] ss:$8 sps:$4 sm:$0xff] (!%p225_p1)   ;;  %v850_v24 = vld [vmem:[%s1188_s3 + $0x30] ss:$8 sps:$4 sm:$0xff] (!%p225_p1)   ;;  %436 = vmatprep.mubr.bf16.mxu0 (!%p225_p1), %v958_v25  ;;  %v851_v26 = vld [vmem:[%s1189_s4] sm:$0xff] (!%p225_p1)   ;;  %v959_v30 = vmov (!%p225_p1), 0.0  }
  0x21   : > { %737 = vmatprep.subr.bf16.mxu1 (!%p225_p1), %v959_v30  ;;  %s960_s22 = smov (!%p225_p1), 16   ;;  %v852_v32 = vld [vmem:[%s1189_s4 + $0x8] sm:$0xff] (!%p225_p1)   ;;  %v853_v33 = vld [vmem:[%s1189_s4 + $0x10] sm:$0xff] (!%p225_p1)   ;;  %v854_v34 = vld [vmem:[%s1189_s4 + $0x18] sm:$0xff] (!%p225_p1)   ;;  %vm342_vm3 = vcmask (!%p225_p1), 130048   ;;  %vm345_vm4 = vcmask (!%p225_p1), 261120  }
  0x22   : > { %738 = vmatpush3.bf16.msra.mxu1 (!%p225_p1), %v851_v26  ;;  %v855_v35 = vld [vmem:[%s1189_s4 + $0x20] sm:$0xff] (!%p225_p1)   ;;  %v856_v36 = vld [vmem:[%s1189_s4 + $0x28] sm:$0xff] (!%p225_p1)   ;;  %vm348_vm5 = vcmask (!%p225_p1), 392192   ;;  %vm400_vm6 = vcmask (!%p225_p1), 523264   ;;  %v857_v53 = vld [vmem:[%s1189_s4 + $0x30] sm:$0xff] (!%p225_p1)   ;;  %vm963_vm7 = vmmov (!%p225_p1), 0  }
  0x23   : > { %407 = vmatpush1.bf16.msra.mxu0 (!%p225_p1), %v844_v3  ;;  %739 = vmatprep.subr.bf16.mxu1 (!%p225_p1), %v959_v30  ;;  %v858_v54 = vld [vmem:[%s1189_s4 + $0x38] sm:$0xff] (!%p225_p1)   ;;  %s570_s28 = sld [smem:[#allocation3 + %s947_s25]] (!%p225_p1)  ;;  %s265_s29 = sand.u32 (!%p225_p1), 1, %s939_s24  }
  0x24   : > { %408 = vmatprep.subr.bf16.mxu0 (!%p225_p1), %v845_v4  ;;  %753 = vmatprep.mubr.msk.bf16.mxu1 (!%p225_p1), %vm963_vm7, %v959_v30  ;;  %s727_s12 = sshll.u32 (!%p225_p1), %s947_s25, 8  ;;  %s1139_s16 = scalar_lea.sflag (!%p225_p1), [#allocation5], %s265_s29 }
  0x25   : > { %s274_s13 = scalar_select %p273_p2, %s947_s25, 1 }
  0x26   : > { %740 = vmatpush3.bf16.msra.mxu1 %v852_v32  ;;  %s964_s17 = smov [#allocation4]  }
  0x27   : > { %s757_s18 = smul.u32 24, %s274_s13  ;;  %409 = vmatpush1.bf16.msra.mxu0 %v847_v5  ;;  %741 = vmatprep.subr.bf16.mxu1 %v959_v30 }
  0x28   : > { %410 = vmatprep.subr.bf16.mxu0 %v848_v8 }
  0x29   : > { %s280_s6 = scalar_lea.vmem %s1186_s1, %s757_s18  ;;  %s726_s8 = sadd.s32 16, %s757_s18 }
  0x2a   : > { %s295_s15 = scalar_lea.vmem %s1187_s2, %s726_s8  ;;  %v1081_v6 = vld [vmem:[%s280_s6] sm:$0xff]  ;;  %v1083_v7 = vld [vmem:[%s280_s6 + $0x8] sm:$0xff]  ;;  %s961_s6 = smov 48   ;;  %742 = vmatpush3.bf16.msra.mxu1 %v853_v33 }
  0x2b   : > { %v302_v9 = vld [vmem:[%s295_s15] sm:$0xff]  ;;  %v307_v10 = vrot.slane %v1081_v6, 1  ;;  %v308_v11 = vrot.slane %v1083_v7, 1  ;;  %v319_v12 = vrot.slane %v1081_v6, 2  ;;  %v320_v13 = vrot.slane %v1083_v7, 2  ;;  %411 = vmatpush1.bf16.msra.mxu0 %v850_v24  ;;  %s962_s8 = smov 32   ;;  %743 = vmatprep.subr.bf16.mxu1 %v959_v30  ;;  %s1137_s15 = scalar_lea.hbm %s1190_s5, %s727_s12 }
  0x2c   : > { %v310_v14 = vrot.slane %v302_v9, 1  ;;  %v322_v15 = vrot.slane %v302_v9, 2  ;;  %v331_v16 = vrot.slane %v1081_v6, 3  ;;  %v332_v17 = vrot.slane %v1083_v7, 3  ;;  %s879_s18 = sshll.u32 %s964_s17, 4  ;;  %s880_s18 = int_to_ptr.vmem [resolvable:$false] %s879_s18 }
  0x2d   : > { %v309_v18 = vsel %vm306_vm0, %v307_v10, %v308_v11  ;;  %v334_v19 = vrot.slane %v302_v9, 3  ;;  %v321_v21 = vsel %vm318_vm1, %v319_v12, %v320_v13  ;;  %v571_v10 = vstv %s570_s28  ;;  %s881_s19 = scalar_lea.vmem %s880_s18, 512 }
  0x2e   : > { %v311_v20 = vsel %vm306_vm0, %v308_v11, %v310_v14  ;;  %v323_v22 = vsel %vm318_vm1, %v320_v13, %v322_v15  ;;  %v333_v23 = vsel %vm330_vm2, %v331_v16, %v332_v17  ;;  %744 = vmatpush3.bf16.msra.mxu1 %v854_v34 }
  0x2f   : > { %v824_v27 = vpack.i.bf16 %v311_v20, %v309_v18  ;;  %v335_v28 = vsel %vm330_vm2, %v332_v17, %v334_v19  ;;  %v829_v31 = vpack.i.bf16 %v323_v22, %v321_v21  ;;  %745 = vmatprep.subr.bf16.mxu1 %v959_v30 }
  0x30   : > { %v834_v29 = vpack.i.bf16 %v335_v28, %v333_v23 }
  0x31   : > { %825 = vrot.lane.b32.xlu0 %v824_v27, %s960_s22 }
  0x32   : > { %835 = vrot.lane.b32.xlu1 %v834_v29, %s961_s6  ;;  %746 = vmatpush3.bf16.msra.mxu1 %v855_v35  ;;  %s700_s6 = sshll.u32 %s265_s29, 4 }
  0x33   : > { %747 = vmatprep.subr.bf16.mxu1 %v959_v30 }
  0x35   : > { %830 = vrot.lane.b32.xlu0 %v829_v31, %s962_s8  ;;  %s267_s8 = scalar_lea.vmem [#allocation4], %s700_s6 }
  0x36   : > { %748 = vmatpush3.bf16.msra.mxu1 %v856_v36  ;;  %s598_s11 = sshll.u32 %s267_s8, 4  ;;  %s1132_s11 = int_to_ptr.vmem [resolvable:$true] %s598_s11 }
  0x37   : > { %749 = vmatprep.subr.bf16.mxu1 %v959_v30  ;;  %s875_s25 = scalar_lea.vmem %s1132_s11, 256  ;;  %p882_p6 = scmp.lt.s32.totalorder %s1132_s11, %s880_s18 }
  0x38   : > { %p876_p3 = scmp.ne.s32.totalorder %s1132_s11, %s875_s25  ;;  %p883_p7 = scmp.lt.s32.totalorder %s881_s19, %s875_s25 }
  0x3a   : > { %750 = vmatpush3.bf16.msra.mxu1 %v857_v53  ;;  %p877_p4 = pnand %p876_p3, %p1040_p9  ;;  %p884_p8 = por %p883_p7, %p882_p6 }
  0x3b   : > { %751 = vmatprep.subr.bf16.mxu1 %v959_v30 }
  0x3c   : > { %p878_p5 = pneg %p877_p4 }
  0x3e   : > { %752 = vmatpush3.bf16.msra.mxu1 %v858_v54  ;;  %p885_p10 = pnand %p884_p8, %p878_p5 }
  0xa3   : > { %v826_v37 = vpop.permute.xlu0 %825 }
  0xa4   : > { %v836_v38 = vpop.permute.xlu1 %835  ;;  %v828_v39 = vunpack.i.h.bf16 %v826_v37  ;;  %v827_v40 = vunpack.i.l.bf16 %v826_v37 }
  0xa5   : > { %v838_v42 = vunpack.i.h.bf16 %v836_v38  ;;  %v837_v43 = vunpack.i.l.bf16 %v836_v38 }
  0xa6   : > { %v344_v46 = vsel %vm342_vm3, %v1083_v7, %v828_v39  ;;  %v343_v47 = vsel %vm342_vm3, %v1081_v6, %v827_v40  ;;  %v563_v6 = vlaneseq }
  0xa7   : > { %v831_v41 = vpop.permute.xlu0 %830 }
  0xa8   : > { %v833_v44 = vunpack.i.h.bf16 %v831_v41  ;;  %v832_v45 = vunpack.i.l.bf16 %v831_v41  ;;  %v564_v9 = vshrl.u32 %v563_v6, 7 }
  0xaa   : > { %v346_v48 = vsel %vm345_vm4, %v343_v47, %v832_v45  ;;  %v347_v49 = vsel %vm345_vm4, %v344_v46, %v833_v44  ;;  %v565_v11 = vadd.s32 8, %v564_v9  ;;  %vm572_vm8 = vcmp.lt.s32.totalorder %v564_v9, %v571_v10 }
  0xab   : > { %v349_v50 = vsel %vm348_vm5, %v346_v48, %v837_v43  ;;  %v350_v51 = vsel %vm348_vm5, %v347_v49, %v838_v42 }
  0xac   : > { %v351_v52 = vpack.c.bf16 %v350_v51, %v349_v50  ;;  %vm573_vm9 = vcmp.lt.s32.totalorder %v565_v11, %v571_v10 }
  0xae   : > { %711 = vmatmul.mubr.msk.bf16.vlgmr.msra.gmra.mrb[0].mxu0 %vm400_vm6, %v351_v52 }
 0x181   : > { %v438_v55 = vpop.f32.mrb[0].mxu0 }
 0x182   : > { %v447_v56 = vmul.f32 %v438_v55, %v438_v55  ;;  %v440_v57 = vpop.f32.mrb[1].mxu0 }
 0x183   : > { %v449_v58 = vmul.f32 %v440_v57, %v440_v57  ;;  %v442_v59 = vpop.f32.mrb[2].mxu0 }
 0x184   : > { %v448_v60 = vmul.f32 %v442_v59, %v442_v59  ;;  %v444_v61 = vpop.f32.mrb[3].mxu0 }
 0x185   : > { %v451_v62 = vadd.f32 %v449_v58, %v447_v56  ;;  %v450_v63 = vmul.f32 %v444_v61, %v444_v61 }
 0x187   : > { %v452_v0 = vadd.f32 %v450_v63, %v448_v60 }
 0x189   : > { %v453_v1 = vpack.c.bf16 %v452_v0, %v451_v62 }
 0x18b   : > { %754 = vmatmul.mubr.bf16.vlgmr.msra.gmra.mrb[0].mxu1 %v453_v1 }
 0x25e   : > { %v552_v2 = vpop.f32.mrb[0].mxu1 }
 0x25f   : > { %v553_v3 = vadd.f32 1e-12, %v552_v2  ;;  %v755_v4 = vpop.f32.mrb[1].mxu1 }
 0x260   : > { %v555_v5 = vpop.f32.mrb[2].mxu1 }
 0x261   : > { %859 = vlog2.f32 %v553_v3  ;;  %v556_v7 = vadd.f32 1e-12, %v555_v5  ;;  %v756_v8 = vpop.f32.mrb[3].mxu1 }
 0x263   : > { %861 = vlog2.f32 %v556_v7 }
 0x26b   : > { %v860_v12 = vpop.eup %859 }
 0x26c   : > { %v560_v13 = vmul.f32 0.6931472, %v860_v12 }
 0x26d   : > { %v862_v14 = vpop.eup %861 }
 0x26e   : > { %v578_v15 = vsel %vm572_vm8, %v560_v13, 0.0  ;;  %v562_v16 = vmul.f32 0.6931472, %v862_v14 }
 0x26f   : > { %580 = vst [vmem:[%s267_s8] sm:$0xff] %v578_v15 }
 0x270   : > { %v579_v17 = vsel %vm573_vm9, %v562_v16, 0.0 }
 0x271   : > { %581 = vst [vmem:[%s267_s8 + $0x8] sm:$0xff] %v579_v17 }
 0x272   : > { %888 = shalt.err (!%p885_p10)
}
 0x273   : > { %s889_s20 = scalar_lea.hbm %s1137_s15, 256  ;;  %s893_s28 = scalar_lea.hbm %s1190_s5, 512 }
 0x274   : > { %p890_p11 = scmp.ne.s32.totalorder %s1137_s15, %s889_s20  ;;  %p894_p1 = scmp.lt.u32.totalorder %s1137_s15, %s1190_s5 }
 0x275   : > { %p895_p2 = scmp.lt.u32.totalorder %s893_s28, %s889_s20  ;;  %p897_p4 = scmp.lt.u32.totalorder %s889_s20, %s1137_s15 }
 0x276   : > { %p891_p12 = pnand %p890_p11, %p1040_p9 }
 0x277   : > { %p896_p3 = por %p895_p2, %p894_p1 }
 0x278   : > { %p892_p0 = pneg %p891_p12 }
 0x279   : > { %p898_p5 = por %p897_p4, %p896_p3 }
 0x27b   : > { %p899_p6 = pnand %p898_p5, %p892_p0 }
 0x27d   : > { %902 = shalt.err (!%p899_p6)
}
 0x27e   : > { %s965_s8 = smov 128   ;;  %s966_s12 = smov 8  }
 0x27f   : > { %759 = dma.vmem_to_hbm [thread:$0]  (%p1040_p9), %s1132_s11, 256, %s1137_s15, %s1139_s16, %s965_s8, %s965_s8, %s966_s12  }
 0x280 PF: > { %p766_p7 = scmp.ge.s32.totalorder %s955_s27, 2  ;;  %s613_s13 = sand.u32 1, %s935_s23  }
 0x281   : > { %s614_s14 = scalar_lea.sflag [#allocation5], %s613_s13 }
 0x282   : > { %p762_p8 = pnand %p766_p7, %p1047_p13 }
 0x284   : > { %930 = dma.done.wait (!%p762_p8), %s614_s14, 256  }
 0x285   : > { %932 = vsyncadd (!%p762_p8), %s614_s14, 4294967040  ;;  %s24_s27 = sadd.s32 1, %s955_s27   ;;  %s1193_s23 = smov %s939_s24 }
 0x286   : > { %p21_p10 = scmp.ge.s32.totalorder %s24_s27, 4   ;;  %s1194_s24 = smov %s943_s0 }
 0x287   : > { %s1195_s0 = smov %s1053_s10  ;;  %s1196_s25 = smov %s951_s26 }
 0x288   : > { %s1197_s26 = smov %s1199_s30  ;;  %23 = sbr.rel (!%p21_p10) target bundleno = 19 (0x13), region = 74 }
 0x28f   :  { %619 = vsyncpa [#allocation5], 1 }
 0x290   :  { %621 = vsyncpa [#allocation5 + $0x1], 1 }

</bundles_post_ra>
